<compile_context>
chip_gen: v5e
topology: v5e:2x2
jax: 0.10.0
libtpu: 0.0.40
codegen_flags: <defaults>
</compile_context>

<pallas_src>
import math
import functools

import jax
import jax.numpy as jnp
from jax.experimental import pallas as pl
from jax.experimental.pallas import tpu as pltpu

EPS = 1e-7


def _artanh(x):
    # arctanh via log (guaranteed Mosaic lowering through EUP log).
    return 0.5 * jnp.log((1.0 + x) / (1.0 - x))


def spectral_filter_kernel(ab_ref, x_ref, wt_ref, b_ref, m_ref, o_ref, *,
                           curvature, approx_recip):
    x = x_ref[...].astype(jnp.float32)                       # (tb, Dp)
    sc = jnp.float32(math.sqrt(curvature))
    alpha = ab_ref[0]
    beta = ab_ref[1]

    # --- hyperbolic log map at origin (Poincare ball, curvature c) ---
    xnorm = jnp.sqrt(jnp.sum(x * x, axis=-1, keepdims=True))
    xnorm_s = jnp.maximum(xnorm, EPS)
    arg = jnp.clip(sc * xnorm_s, 0.0, 1.0 - EPS)
    if approx_recip:
        inv_x = pl.reciprocal(sc * xnorm_s, approx=True)      # EUP slot
    else:
        inv_x = 1.0 / (sc * xnorm_s)
    u = (_artanh(arg) * inv_x) * x

    # --- freq_modulation: Linear(D, D) + tanh (MXU, f32 accumulate) ---
    pre = jnp.dot(u.astype(wt_ref.dtype), wt_ref[...],
                  preferred_element_type=jnp.float32) + b_ref[...]
    # tanh in the MXU dtype (bf16 in fast mode): the result feeds the second
    # matmul in that dtype anyway, and bf16 EUP is ~2x on v6e/v7x. In exact
    # mode m_ref.dtype is f32, so this is a no-op cast.
    u_mod = jnp.tanh(pre.astype(m_ref.dtype))

    # --- FFT -> complex filter -> IFFT(real), fused into one matmul with M ---
    v = jnp.dot(u_mod, m_ref[...], preferred_element_type=jnp.float32)

    # --- hyperbolic exp map at origin ---
    vnorm = jnp.sqrt(jnp.sum(v * v, axis=-1, keepdims=True))
    vnorm_s = jnp.maximum(vnorm, EPS)
    if approx_recip:
        inv_v = pl.reciprocal(sc * vnorm_s, approx=True)
    else:
        inv_v = 1.0 / (sc * vnorm_s)
    y = (jnp.tanh(sc * vnorm_s) * inv_v) * v

    # --- residual mix ---
    o_ref[...] = (alpha * y + beta * x).astype(o_ref.dtype)


def _round_up(v, m):
    return ((v + m - 1) // m) * m


def _cdiv(a, b):
    return -(-a // b)


def _vmem_capacity_bytes():
    try:
        return int(pltpu.get_tpu_info().vmem_capacity_bytes)
    except Exception:
        return 64 * 1024 * 1024   # conservative fallback (v7x per-TC VMEM)


def _choose_batch_tile(B, Dp, const_bytes, budget_bytes, io_itemsize, max_tb):
    """Pick (tb, n_tiles): largest VMEM-fitting, sublane-aligned, balanced."""
    # Sublane alignment: 8 rows for f32, 16 for bf16, 32 for fp8 blocks.
    sub = 8 * max(1, 4 // io_itemsize)
    # Per-row VMEM: double-buffered x + out tiles plus ~8 f32 (tb, Dp)
    # in-kernel temporaries of headroom.
    per_row = Dp * (2 * io_itemsize + 2 * io_itemsize + 8 * 4)
    free = max(budget_bytes - const_bytes - (1 << 20), per_row * sub)
    tb_vmem = max(sub, (free // per_row) // sub * sub)
    tb_cap = max(sub, min(tb_vmem, max_tb, _round_up(B, sub)))
    # At least 2 grid steps (when the batch allows) so the single "parallel"
    # grid axis shards across both TensorCores on v7x; on 1-TC chips the
    # extra step costs ~0.35us, negligible.
    min_tiles = 2 if B > sub else 1
    n_tiles = max(min_tiles, _cdiv(B, tb_cap))
    tb = _round_up(_cdiv(B, n_tiles), sub)      # balanced tiles: no mostly-empty tail
    n_tiles = max(min_tiles, _cdiv(B, tb))
    return tb, n_tiles


def make_enhanced_spectral_filter(w, b, g_real, g_imag, *, curvature=1e-3,
                                  mxu_dtype=jnp.bfloat16, io_dtype=jnp.bfloat16,
                                  approx_recip=True, max_tb=2048,
                                  vmem_fraction=0.8):
    """Precompute all grid-invariant operands once; return apply(x, alpha, beta)."""
    f32 = jnp.float32
    w = jnp.asarray(w, f32)
    b = jnp.asarray(b, f32)
    g_real = jnp.asarray(g_real, f32)
    g_imag = jnp.asarray(g_imag, f32)
    D = w.shape[0]
    # Lane-dense feature padding (multiple of 128); padded columns are exact
    # zeros end-to-end and are sliced off in apply().
    Dp = max(128, _round_up(D, 128))

    # Fused spectral map: for real a,
    #   real(ifft(fft(a) * (gr + i*gi))) = a @ M  with
    #   M = (1/D) [ C diag(gr) C + S diag(gi) C - C diag(gi) S + S diag(gr) S ]
    # where C[n,k]=cos(2*pi*n*k/D), S[n,k]=sin(2*pi*n*k/D).
    # Integer mod BEFORE the float multiply keeps the trig argument in
    # [0, 2*pi) (exact for D up to ~46000 in int32).
    n = jnp.arange(D, dtype=jnp.int32)
    phase = ((n[:, None] * n[None, :]) % D).astype(f32) * (2.0 * math.pi / D)
    C = jnp.cos(phase)
    S = jnp.sin(phase)
    M = ((C * g_real) @ C + (S * g_imag) @ C - (C * g_imag) @ S + (S * g_real) @ S) / D

    def pad2(a, r, c):
        return jnp.pad(a, ((0, r - a.shape[0]), (0, c - a.shape[1])))

    wt_p = pad2(w.T, Dp, Dp).astype(mxu_dtype)               # Linear is x @ W.T
    m_p = pad2(M, Dp, Dp).astype(mxu_dtype)
    b_p = jnp.pad(b, (0, Dp - D)).reshape(1, Dp)

    mxu_isz = jnp.dtype(mxu_dtype).itemsize
    io_isz = jnp.dtype(io_dtype).itemsize
    const_bytes = 2 * Dp * Dp * mxu_isz + Dp * 4
    budget = int(_vmem_capacity_bytes() * vmem_fraction)
    # TODO(synk): when 2*Dp^2*mxu_isz alone exceeds the per-core VMEM budget
    # (e.g. v7x with Dp >= ~4096 bf16), add a grid axis that tiles M's
    # output-feature dimension instead of shrinking the batch tile.

    kernel = functools.partial(spectral_filter_kernel,
                               curvature=float(curvature),
                               approx_recip=approx_recip)

    def apply(x, alpha, beta):
        B, d_in = x.shape
        assert d_in == D, f"expected feature dim {D}, got {d_in}"
        tb, n_tiles = _choose_batch_tile(B, Dp, const_bytes, budget, io_isz, max_tb)
        Bp = n_tiles * tb

        x_p = jnp.pad(x.astype(io_dtype), ((0, Bp - B), (0, Dp - D)))
        ab = jnp.stack([jnp.asarray(alpha, f32).reshape(()),
                        jnp.asarray(beta, f32).reshape(())])   # (2,) in SMEM

        out = pl.pallas_call(
            kernel,
            out_shape=jax.ShapeDtypeStruct((Bp, Dp), io_dtype),
            grid_spec=pl.GridSpec(
                grid=(n_tiles,),
                in_specs=[
                    # alpha/beta scalars.
                    pl.BlockSpec(memory_space=pltpu.MemorySpace.SMEM),
                    # x tile: pipelined (double-buffered) over the batch grid.
                    pl.BlockSpec((tb, Dp), lambda i: (i, 0)),
                    # Grid-invariant operands: whole-array VMEM residents
                    # (single copy, no per-step DMA, no double buffering).
                    pl.BlockSpec(memory_space=pltpu.MemorySpace.VMEM),   # W^T
                    pl.BlockSpec(memory_space=pltpu.MemorySpace.VMEM),   # bias
                    pl.BlockSpec(memory_space=pltpu.MemorySpace.VMEM),   # fused M
                ],
                out_specs=pl.BlockSpec((tb, Dp), lambda i: (i, 0)),
            ),
            compiler_params=pltpu.CompilerParams(
                dimension_semantics=("parallel",),
                vmem_limit_bytes=budget),
        )(ab, x_p, wt_p, b_p, m_p)

        return out[:B, :D]

    return jax.jit(apply)


def reference(x, w, b, g_real, g_imag, alpha, beta, c):
    # Pure-JAX reference (uses jnp.fft) for the correctness check.
    sc = math.sqrt(c)
    xnorm = jnp.maximum(jnp.linalg.norm(x, axis=-1, keepdims=True), EPS)
    arg = jnp.clip(sc * xnorm, 0.0, 1.0 - EPS)
    u = jnp.arctanh(arg) / (sc * xnorm) * x
    u_mod = jnp.tanh(u @ w.T + b)
    U = jnp.fft.fft(u_mod, axis=1)
    V = U * (g_real + 1j * g_imag)[None, :]
    v = jnp.real(jnp.fft.ifft(V, axis=1))
    vnorm = jnp.maximum(jnp.linalg.norm(v, axis=-1, keepdims=True), EPS)
    y = jnp.tanh(sc * vnorm) / (sc * vnorm) * v
    return alpha * y + beta * x


if __name__ == "__main__":
    B, D = 16, 32
    c = 1e-3

    key = jax.random.PRNGKey(0)
    kx, kw, kb, kgr, kgi = jax.random.split(key, 5)

    x = jax.random.normal(kx, (B, D), dtype=jnp.float32)

    bound = 1.0 / math.sqrt(D)
    w = jax.random.uniform(kw, (D, D), jnp.float32, -bound, bound)   # Linear W
    b = jax.random.uniform(kb, (D,), jnp.float32, -bound, bound)     # Linear b
    # Module inits g_real=1, g_imag=0 (identity filter); perturb so the fused
    # spectral path is actually exercised by the check.
    g_real = 1.0 + 0.2 * jax.random.normal(kgr, (D,), jnp.float32)
    g_imag = 0.2 * jax.random.normal(kgi, (D,), jnp.float32)
    alpha = jnp.full((1,), 0.8, jnp.float32)
    beta = jnp.full((1,), 0.2, jnp.float32)

    ref = reference(x, w, b, g_real, g_imag, alpha[0], beta[0], c)

    # Exact mode (f32 MXU / f32 I/O, exact reciprocals): tight tolerance.
    apply_exact = make_enhanced_spectral_filter(
        w, b, g_real, g_imag, curvature=c,
        mxu_dtype=jnp.float32, io_dtype=jnp.float32, approx_recip=False)
    out_exact = jax.block_until_ready(apply_exact(x, alpha, beta))
    assert out_exact.shape == (B, D)
    assert jnp.allclose(out_exact, ref, atol=2e-3, rtol=2e-3)

    # Fast mode (bf16 MXU operands + bf16 I/O + approx reciprocals): looser.
    apply_fast = make_enhanced_spectral_filter(
        w, b, g_real, g_imag, curvature=c,
        mxu_dtype=jnp.bfloat16, io_dtype=jnp.bfloat16, approx_recip=True)
    out_fast = jax.block_until_ready(apply_fast(x, alpha, beta))
    assert out_fast.shape == (B, D)
    assert jnp.allclose(out_fast.astype(jnp.float32), ref, atol=3e-2, rtol=3e-2)

    print("KERNEL_OK")
</pallas_src>

<mosaic_0001>
module attributes {stable_mosaic.version = 11 : i64} {
  func.func @spectral_filter_kernel(%arg0: i32, %arg1: memref<2xf32, #tpu.memory_space<smem>>, %arg2: memref<8x128xf32, #tpu.memory_space<vmem>>, %arg3: memref<128x128xf32, #tpu.memory_space<vmem>>, %arg4: memref<1x128xf32, #tpu.memory_space<vmem>>, %arg5: memref<128x128xf32, #tpu.memory_space<vmem>>, %arg6: memref<8x128xf32, #tpu.memory_space<vmem>>) attributes {dimension_semantics = [#tpu.dimension_semantics<parallel>], iteration_bounds = array<i64: 2>, scalar_prefetch = 0 : i64, scratch_operands = 0 : i64, tpu.core_type = #tpu.core_type<tc>, window_params = [{transform_indices = @transform_0, window_bounds = array<i64: 2>}, {transform_indices = @transform_1, window_bounds = array<i64: 8, 128>}, {pipeline_mode = #tpu.pipeline_mode<synchronous>, transform_indices = @transform_2, window_bounds = array<i64: 128, 128>}, {pipeline_mode = #tpu.pipeline_mode<synchronous>, transform_indices = @transform_3, window_bounds = array<i64: 1, 128>}, {pipeline_mode = #tpu.pipeline_mode<synchronous>, transform_indices = @transform_4, window_bounds = array<i64: 128, 128>}, {transform_indices = @transform_5, window_bounds = array<i64: 8, 128>}]} {
    %c0 = arith.constant 0 : index
    %c0_0 = arith.constant 0 : index
    %0 = vector.load %arg2[%c0, %c0_0] : memref<8x128xf32, #tpu.memory_space<vmem>>, vector<8x128xf32>
    %c0_1 = arith.constant 0 : index
    %1 = memref.load %arg1[%c0_1] : memref<2xf32, #tpu.memory_space<smem>>
    %c1 = arith.constant 1 : index
    %2 = memref.load %arg1[%c1] : memref<2xf32, #tpu.memory_space<smem>>
    %3 = arith.mulf %0, %0 : vector<8x128xf32>
    %cst = arith.constant dense<0.000000e+00> : vector<8xf32>
    %4 = vector.multi_reduction <add>, %3, %cst [1] : vector<8x128xf32> to vector<8xf32>
    %5 = vector.shape_cast %4 : vector<8xf32> to vector<8x1xf32>
    %6 = math.sqrt %5 : vector<8x1xf32>
    %cst_2 = arith.constant 1.000000e-07 : f32
    %7 = vector.broadcast %cst_2 : f32 to vector<8x1xf32>
    %8 = arith.maximumf %6, %7 : vector<8x1xf32>
    %cst_3 = arith.constant 0.0316227749 : f32
    %9 = vector.broadcast %cst_3 : f32 to vector<8x1xf32>
    %10 = arith.mulf %9, %8 : vector<8x1xf32>
    %cst_4 = arith.constant 0.000000e+00 : f32
    %cst_5 = arith.constant 0.99999988 : f32
    %11 = vector.broadcast %cst_4 : f32 to vector<8x1xf32>
    %12 = arith.maximumf %11, %10 : vector<8x1xf32>
    %13 = vector.broadcast %cst_5 : f32 to vector<8x1xf32>
    %14 = arith.minimumf %13, %12 : vector<8x1xf32>
    %cst_6 = arith.constant 0.0316227749 : f32
    %15 = vector.broadcast %cst_6 : f32 to vector<8x1xf32>
    %16 = arith.mulf %15, %8 : vector<8x1xf32>
    %cst_7 = arith.constant 1.000000e+00 : f32
    %17 = vector.broadcast %cst_7 : f32 to vector<8x1xf32>
    %18 = arith.divf %17, %16 : vector<8x1xf32>
    %cst_8 = arith.constant 1.000000e+00 : f32
    %19 = vector.broadcast %cst_8 : f32 to vector<8x1xf32>
    %20 = arith.addf %19, %14 : vector<8x1xf32>
    %cst_9 = arith.constant 1.000000e+00 : f32
    %21 = vector.broadcast %cst_9 : f32 to vector<8x1xf32>
    %22 = arith.subf %21, %14 : vector<8x1xf32>
    %23 = arith.divf %20, %22 : vector<8x1xf32>
    %24 = math.log %23 : vector<8x1xf32>
    %cst_10 = arith.constant 5.000000e-01 : f32
    %25 = vector.broadcast %cst_10 : f32 to vector<8x1xf32>
    %26 = arith.mulf %25, %24 : vector<8x1xf32>
    %27 = arith.mulf %26, %18 : vector<8x1xf32>
    %28 = vector.broadcast %27 : vector<8x1xf32> to vector<8x128xf32>
    %29 = arith.mulf %28, %0 : vector<8x128xf32>
    %c0_11 = arith.constant 0 : index
    %c0_12 = arith.constant 0 : index
    %30 = vector.load %arg3[%c0_11, %c0_12] : memref<128x128xf32, #tpu.memory_space<vmem>>, vector<128x128xf32>
    %cst_13 = arith.constant dense<0.000000e+00> : vector<8x128xf32>
    %31 = tpu.matmul %29, %30, %cst_13 {dimension_numbers = #tpu.dot_dimension_numbers<[1], [0], [0], [1], [0, 0, 1, 1], [], []>} : vector<8x128xf32>, vector<128x128xf32>, vector<8x128xf32> -> vector<8x128xf32>
    %c0_14 = arith.constant 0 : index
    %c0_15 = arith.constant 0 : index
    %32 = vector.load %arg4[%c0_14, %c0_15] : memref<1x128xf32, #tpu.memory_space<vmem>>, vector<1x128xf32>
    %33 = vector.broadcast %32 : vector<1x128xf32> to vector<8x128xf32>
    %34 = arith.addf %31, %33 : vector<8x128xf32>
    %35 = math.tanh %34 : vector<8x128xf32>
    %c0_16 = arith.constant 0 : index
    %c0_17 = arith.constant 0 : index
    %36 = vector.load %arg5[%c0_16, %c0_17] : memref<128x128xf32, #tpu.memory_space<vmem>>, vector<128x128xf32>
    %cst_18 = arith.constant dense<0.000000e+00> : vector<8x128xf32>
    %37 = tpu.matmul %35, %36, %cst_18 {dimension_numbers = #tpu.dot_dimension_numbers<[1], [0], [0], [1], [0, 0, 1, 1], [], []>} : vector<8x128xf32>, vector<128x128xf32>, vector<8x128xf32> -> vector<8x128xf32>
    %38 = arith.mulf %37, %37 : vector<8x128xf32>
    %cst_19 = arith.constant dense<0.000000e+00> : vector<8xf32>
    %39 = vector.multi_reduction <add>, %38, %cst_19 [1] : vector<8x128xf32> to vector<8xf32>
    %40 = vector.shape_cast %39 : vector<8xf32> to vector<8x1xf32>
    %41 = math.sqrt %40 : vector<8x1xf32>
    %cst_20 = arith.constant 1.000000e-07 : f32
    %42 = vector.broadcast %cst_20 : f32 to vector<8x1xf32>
    %43 = arith.maximumf %41, %42 : vector<8x1xf32>
    %cst_21 = arith.constant 0.0316227749 : f32
    %44 = vector.broadcast %cst_21 : f32 to vector<8x1xf32>
    %45 = arith.mulf %44, %43 : vector<8x1xf32>
    %cst_22 = arith.constant 1.000000e+00 : f32
    %46 = vector.broadcast %cst_22 : f32 to vector<8x1xf32>
    %47 = arith.divf %46, %45 : vector<8x1xf32>
    %cst_23 = arith.constant 0.0316227749 : f32
    %48 = vector.broadcast %cst_23 : f32 to vector<8x1xf32>
    %49 = arith.mulf %48, %43 : vector<8x1xf32>
    %50 = math.tanh %49 : vector<8x1xf32>
    %51 = arith.mulf %50, %47 : vector<8x1xf32>
    %52 = vector.broadcast %51 : vector<8x1xf32> to vector<8x128xf32>
    %53 = arith.mulf %52, %37 : vector<8x128xf32>
    %54 = vector.broadcast %1 : f32 to vector<8x128xf32>
    %55 = arith.mulf %54, %53 : vector<8x128xf32>
    %56 = vector.broadcast %2 : f32 to vector<8x128xf32>
    %57 = arith.mulf %56, %0 : vector<8x128xf32>
    %58 = arith.addf %55, %57 : vector<8x128xf32>
    %c0_24 = arith.constant 0 : index
    %c0_25 = arith.constant 0 : index
    %59 = vector.load %arg6[%c0_24, %c0_25] : memref<8x128xf32, #tpu.memory_space<vmem>>, vector<8x128xf32>
    tpu.vector_store %arg6[%c0_24, %c0_25], %58 {strides = array<i32>} : memref<8x128xf32, #tpu.memory_space<vmem>>, vector<8x128xf32>,
    return
  }
  func.func @transform_0(%arg0: i32) -> i32 {
    %c0_i32 = arith.constant 0 : i32
    %c0_i32_0 = arith.constant 0 : i32
    return %c0_i32 : i32
  }
  func.func @transform_1(%arg0: i32) -> (i32, i32) {
    %c0_i32 = arith.constant 0 : i32
    %c0_i32_0 = arith.constant 0 : i32
    return %arg0, %c0_i32 : i32, i32
  }
  func.func @transform_2(%arg0: i32) -> (i32, i32) {
    %c0_i32 = arith.constant 0 : i32
    %c0_i32_0 = arith.constant 0 : i32
    %c0_i32_1 = arith.constant 0 : i32
    return %c0_i32, %c0_i32_0 : i32, i32
  }
  func.func @transform_3(%arg0: i32) -> (i32, i32) {
    %c0_i32 = arith.constant 0 : i32
    %c0_i32_0 = arith.constant 0 : i32
    %c0_i32_1 = arith.constant 0 : i32
    return %c0_i32, %c0_i32_0 : i32, i32
  }
  func.func @transform_4(%arg0: i32) -> (i32, i32) {
    %c0_i32 = arith.constant 0 : i32
    %c0_i32_0 = arith.constant 0 : i32
    %c0_i32_1 = arith.constant 0 : i32
    return %c0_i32, %c0_i32_0 : i32, i32
  }
  func.func @transform_5(%arg0: i32) -> (i32, i32) {
    %c0_i32 = arith.constant 0 : i32
    %c0_i32_0 = arith.constant 0 : i32
    return %arg0, %c0_i32 : i32, i32
  }
}

</mosaic_0001>

<bundles_post_ra>
// kernel: apply.1
= control target key start
LH: loop header
LB: loop body
LE: loop exit
PB: predicated region body
PF: predicated region fallthrough
CT: control target
= control target key end

     0   :  { %10 = vsyncpa [#allocation5], 0  ;;  %s982_s0 = inlined_call_operand.vmem [shape: f32[2], index: 0, kind: input, shape index: {}]   ;;  %s983_s1 = inlined_call_operand.vmem [shape: f32[16,128], index: 1, kind: input, shape index: {}]   ;;  %s984_s2 = inlined_call_operand.hbm [shape: f32[128,128], index: 2, kind: input, shape index: {}]   ;;  %s985_s3 = inlined_call_operand.vmem [shape: f32[1,128], index: 3, kind: input, shape index: {}]   ;;  %s986_s4 = inlined_call_operand.hbm [shape: f32[128,128], index: 4, kind: input, shape index: {}]   ;;  %s987_s5 = inlined_call_operand.hbm [shape: f32[16,128], index: 5, kind: output, shape index: {}]  }
   0x1   :  { %11 = vsyncpa [#allocation3], 0 }
   0x2   :  { %12 = vsyncpa [#allocation8], 0 }
   0x3   :  { %13 = vsyncpa [#allocation4], 0 }
   0x4   :  { %15 = vsyncpa [#allocation4 + $0x1], 0  ;;  %s846_s18 = smov 0   ;;  %s848_s19 = smov 0  }
   0x5   :  { %s850_s20 = smov 0   ;;  %s852_s21 = smov 0  }
   0x6 LB: > { %s867_s22 = sadd.s32 4294967295, %s809_s21   ;;  %s554_s23 = sadd.s32 4294967294, %s809_s21   ;;  %s809_s21 = sphi %s852_s21, %s995_s21   ;;  %s805_s20 = sphi %s850_s20, %s994_s20   ;;  %s801_s19 = sphi %s848_s19, %s993_s19   ;;  %s797_s18 = sphi %s846_s18, %s992_s18  }
   0x7   : > { %s871_s24 = sadd.s32 1, %s809_s21   ;;  %s138_s25 = sadd.s32 1, %s805_s20 }
   0x8   : > { %s135_s26 = ssub.s32 %s809_s21, %s871_s24  ;;  %p148_p0 = scmp.ne.s32.totalorder %s805_s20, %s801_s19 }
   0x9   : > { %p136_p1 = scmp.eq.s32.totalorder %s135_s26, 0  ;;  %p149_p2 = scmp.eq.s32.totalorder %s867_s22, 1 }
   0xa   : > { %p154_p3 = scmp.ne.s32.totalorder %s801_s19, %s797_s18  ;;  %p155_p4 = scmp.eq.s32.totalorder %s554_s23, 1 }
   0xb   : > { %s882_s27 = scalar_select %p136_p1, %s805_s20, %s138_s25  }
   0xc   : > { %p884_p5 = por %p149_p2, %p148_p0  ;;  %p888_p6 = por %p155_p4, %p154_p3 }
   0xd   : > { %p555_p7 = scmp.ge.s32.totalorder %s809_s21, 1  ;;  %p162_p8 = scmp.lt.s32.totalorder %s809_s21, 3 }
   0xe   : > { %p599_p9 = scmp.eq.s32.totalorder %s867_s22, 0  ;;  %s174_s8 = sshll.u32 %s982_s0, 4  ;;  %s175_s8 = int_to_ptr.vmem [resolvable:$true] %s174_s8 }
   0xf   : > { %p895_p10 = pnand %p555_p7, %p162_p8  ;;  %s183_s11 = sshll.u32 %s984_s2, 4  ;;  %s184_s11 = int_to_ptr.hbm [resolvable:$true] %s183_s11 }
  0x10   : > { %s811_s13 = smov [#allocation6]   ;;  %s812_s15 = smov [#allocation2]  }
  0x11   : > { %p585_p11 = pneg %p895_p10  ;;  %s185_s14 = sshll.u32 %s811_s13, 4  ;;  %s186_s14 = int_to_ptr.vmem [resolvable:$true] %s185_s14 }
  0x12   : > { %s813_s16 = smov 128   ;;  %s814_s17 = smov 8  }
  0x13   : > { %p909_p12 = pnand %p599_p9, %p585_p11  ;;  %s200_s26 = sshll.u32 %s986_s4, 4  ;;  %s201_s26 = int_to_ptr.hbm [resolvable:$true] %s200_s26 }
  0x14   : > { %s815_s6 = smov [#allocation7]   ;;  %225 = sbr.rel (%p895_p10) target bundleno = 654 (0x28e), region = 40 }
  0x15   : > { %588 = dma.vmem_to_smem (!%p909_p12), %s175_s8, 16, %s812_s15, [#allocation5]  }
  0x16   : > { %591 = dma.hbm_to_vmem [thread:$0]  (!%p909_p12), %s184_s11, 2048, %s186_s14, [#allocation3], %s813_s16, %s813_s16, %s814_s17  }
  0x17   : > { %s202_s7 = sshll.u32 %s815_s6, 4  ;;  %s203_s7 = int_to_ptr.vmem [resolvable:$true] %s202_s7 }
  0x18   : > { %594 = dma.hbm_to_vmem [thread:$0]  (!%p909_p12), %s201_s26, 2048, %s203_s7, [#allocation8], %s813_s16, %s813_s16, %s814_s17  }
  0x19   : > { %780 = dma.done.wait (%p599_p9), [#allocation5], 16  }
  0x1a   : > { %782 = vsyncadd (%p599_p9), [#allocation5], 4294967280 }
  0x1b   : > { %784 = dma.done.wait (%p599_p9), [#allocation3], 2048  }
  0x1c   : > { %786 = vsyncadd (%p599_p9), [#allocation3], 4294965248 }
  0x1d   : > { %788 = dma.done.wait (%p599_p9), [#allocation8], 2048  }
  0x1e   : > { %790 = vsyncadd (%p599_p9), [#allocation8], 4294965248 }
  0x1f   : > { %242 = sfence }
  0x20   : > { %p264_p13 = scmp.lt.s32.totalorder %s867_s22, 1  ;;  %v342_v2 = vld [vmem:[#allocation6 + $0x78] sm:$0xff]  ;;  %v341_v3 = vld [vmem:[#allocation6 + $0x70] sm:$0xff]  ;;  %v340_v4 = vld [vmem:[#allocation6 + $0x68] sm:$0xff]  ;;  %s566_s14 = sld [smem:[#allocation2 + $0x1]] }
  0x21   : > { %347 = vmatpush.msra.mxu0 %v342_v2  ;;  %v339_v5 = vld [vmem:[#allocation6 + $0x60] sm:$0xff]  ;;  %v338_v7 = vld [vmem:[#allocation6 + $0x58] sm:$0xff]  ;;  %v337_v8 = vld [vmem:[#allocation6 + $0x50] sm:$0xff]  ;;  %s269_s15 = sld [smem:[#allocation2]]  ;;  %s261_s16 = sand.u32 1, %s801_s19  }
  0x22   : > { %s265_s30 = scalar_select %p264_p13, %s867_s22, 1  ;;  %v336_v9 = vld [vmem:[#allocation6 + $0x48] sm:$0xff]  ;;  %v335_v10 = vld [vmem:[#allocation6 + $0x40] sm:$0xff]  ;;  %v334_v13 = vld [vmem:[#allocation6 + $0x38] sm:$0xff] }
  0x23   : > { %348 = vmatpush.msra.mxu0 %v341_v3  ;;  %v333_v15 = vld [vmem:[#allocation6 + $0x30] sm:$0xff]  ;;  %v332_v17 = vld [vmem:[#allocation6 + $0x28] sm:$0xff]  ;;  %v331_v19 = vld [vmem:[#allocation6 + $0x20] sm:$0xff]  ;;  %s564_s17 = sshll.u32 %s261_s16, 3  ;;  %s568_s23 = sshll.u32 %s867_s22, 3 }
  0x24   : > { %s565_s8 = sshll.u32 %s265_s30, 3  ;;  %v330_v21 = vld [vmem:[#allocation6 + $0x18] sm:$0xff]  ;;  %v329_v23 = vld [vmem:[#allocation6 + $0x10] sm:$0xff]  ;;  %v328_v26 = vld [vmem:[#allocation6 + $0x8] sm:$0xff]  ;;  %s456_s6 = scalar_lea.hbm %s987_s5, %s568_s23 }
  0x25   : > { %s267_s11 = scalar_lea.vmem %s983_s1, %s565_s8  ;;  %349 = vmatpush.msra.mxu0 %v340_v4  ;;  %v327_v29 = vld [vmem:[#allocation6] sm:$0xff]  ;;  %v383_v34 = vld [vmem:[#allocation7 + $0x78] sm:$0xff]  ;;  %v382_v35 = vld [vmem:[#allocation7 + $0x70] sm:$0xff]  ;;  %s263_s7 = scalar_lea.vmem [#allocation9], %s564_s17 }
  0x26   : > { %v941_v0 = vld [vmem:[%s267_s11] sm:$0xff]  ;;  %384 = vmatpush.msra.mxu1 %v383_v34  ;;  %v381_v36 = vld [vmem:[#allocation7 + $0x68] sm:$0xff]  ;;  %v379_v41 = vld [vmem:[#allocation7 + $0x58] sm:$0xff]  ;;  %s458_s30 = sshll.u32 %s263_s7, 4  ;;  %s460_s8 = sshll.u32 %s456_s6, 4  ;;  %s459_s30 = int_to_ptr.vmem [resolvable:$true] %s458_s30  ;;  %s461_s8 = int_to_ptr.hbm [resolvable:$true] %s460_s8 }
  0x27   : > { %v271_v1 = vmul.f32 %v941_v0, %v941_v0  ;;  %350 = vmatpush.msra.mxu0 %v339_v5  ;;  %v380_v38 = vld [vmem:[#allocation7 + $0x60] sm:$0xff]  ;;  %v378_v45 = vld [vmem:[#allocation7 + $0x50] sm:$0xff]  ;;  %v377_v48 = vld [vmem:[#allocation7 + $0x48] sm:$0xff]  ;;  %s446_s22 = scalar_lea.sflag [#allocation4], %s261_s16  ;;  %s749_s9 = sshra.s32 %s461_s8, 4  ;;  %s750_s9 = int_to_ptr.hbm [resolvable:$true] %s749_s9 }
  0x28   : > { %385 = vmatpush.msra.mxu1 %v382_v35  ;;  %v376_v52 = vld [vmem:[#allocation7 + $0x40] sm:$0xff]  ;;  %v375_v56 = vld [vmem:[#allocation7 + $0x38] sm:$0xff]  ;;  %v374_v59 = vld [vmem:[#allocation7 + $0x30] sm:$0xff]  ;;  %s751_s10 = scalar_lea.hbm %s750_s9, 8  ;;  %s755_s13 = scalar_lea.hbm %s987_s5, 16 }
  0x29   : > { %272 = vadd.xlane.f32.xlu0 %v271_v1  ;;  %351 = vmatpush.msra.mxu0 %v338_v7  ;;  %v373_v60 = vld [vmem:[#allocation7 + $0x28] sm:$0xff]  ;;  %p752_p0 = scmp.ne.s32.totalorder %s750_s9, %s751_s10  ;;  %p756_p3 = scmp.lt.s32.totalorder %s750_s9, %s987_s5 }
  0x2a   : > { %386 = vmatpush.msra.mxu1 %v381_v36  ;;  %p757_p4 = scmp.lt.s32.totalorder %s755_s13, %s751_s10 }
  0x2b   : > { %352 = vmatpush.msra.mxu0 %v337_v8  ;;  %p753_p1 = pnand %p752_p0, %p884_p5 }
  0x2c   : > { %387 = vmatpush.msra.mxu1 %v380_v38  ;;  %p758_p7 = por %p757_p4, %p756_p3 }
  0x2d   : > { %353 = vmatpush.msra.mxu0 %v336_v9  ;;  %v372_v9 = vld [vmem:[#allocation7 + $0x20] sm:$0xff]  ;;  %p754_p2 = pneg %p753_p1 }
  0x2e   : > { %388 = vmatpush.msra.mxu1 %v379_v41 }
  0x2f   : > { %354 = vmatpush.msra.mxu0 %v335_v10  ;;  %v371_v10 = vld [vmem:[#allocation7 + $0x18] sm:$0xff]  ;;  %p759_p8 = pnand %p758_p7, %p754_p2 }
  0x30   : > { %389 = vmatpush.msra.mxu1 %v378_v45 }
  0x31   : > { %355 = vmatpush.msra.mxu0 %v334_v13  ;;  %v368_v13 = vld [vmem:[#allocation7] sm:$0xff] }
  0x32   : > { %390 = vmatpush.msra.mxu1 %v377_v48 }
  0x33   : > { %356 = vmatpush.msra.mxu0 %v333_v15 }
  0x34   : > { %391 = vmatpush.msra.mxu1 %v376_v52 }
  0x35   : > { %357 = vmatpush.msra.mxu0 %v332_v17 }
  0x36   : > { %392 = vmatpush.msra.mxu1 %v375_v56 }
  0x37   : > { %358 = vmatpush.msra.mxu0 %v331_v19 }
  0x38   : > { %393 = vmatpush.msra.mxu1 %v374_v59 }
  0x39   : > { %359 = vmatpush.msra.mxu0 %v330_v21 }
  0x3a   : > { %394 = vmatpush.msra.mxu1 %v373_v60 }
  0x3b   : > { %360 = vmatpush.msra.mxu0 %v329_v23 }
  0x3c   : > { %395 = vmatpush.msra.mxu1 %v372_v9 }
  0x3d   : > { %361 = vmatpush.msra.mxu0 %v328_v26 }
  0x3e   : > { %396 = vmatpush.msra.mxu1 %v371_v10 }
  0x3f   : > { %362 = vmatpush.msra.mxu0 %v327_v29 }
  0x9c   : > { %v273_v6 = vpop.xlane.xlu0 %272 }
  0x9d   : > { %644 = vrsqrt.f32 %v273_v6  ;;  %vm281_vm0 = vcmp.eq.f32.partialorder %v273_v6, inf  ;;  %v284_v24 = vand.u32 2147483648, %v273_v6  ;;  %vm283_vm1 = vcmp.eq.f32.partialorder %v273_v6, 0.0 }
  0xa3   : > { %v645_v11 = vpop.eup %644 }
  0xa4   : > { %v275_v12 = vmul.f32 %v645_v11, %v273_v6 }
  0xa6   : > { %v276_v14 = vmul.f32 %v645_v11, %v275_v12  ;;  %v369_v12 = vld [vmem:[#allocation7 + $0x8] sm:$0xff] }
  0xa8   : > { %v277_v16 = vmul.f32 0.5, %v276_v14  ;;  %v643_v14 = vld [vmem:[%s985_s3] ss:$0 sm:$0xff] }
  0xaa   : > { %v278_v18 = vsub.f32 1.5, %v277_v16 }
  0xac   : > { %v279_v20 = vmul.f32 %v645_v11, %v278_v18  ;;  %v370_v11 = vld [vmem:[#allocation7 + $0x10] sm:$0xff] }
  0xad   : > { %397 = vmatpush.msra.mxu1 %v370_v11 }
  0xae   : > { %v280_v22 = vmul.f32 %v279_v20, %v273_v6 }
  0xaf   : > { %398 = vmatpush.msra.mxu1 %v369_v12 }
  0xb0   : > { %v282_v25 = vsel %vm281_vm0, %v273_v6, %v280_v22 }
  0xb1   : > { %v285_v27 = vsel %vm283_vm1, %v284_v24, %v282_v25  ;;  %399 = vmatpush.msra.mxu1 %v368_v13 }
  0xb2   : > { %v286_v28 = vmax.f32 %v285_v27, 1e-07 }
  0xb4   : > { %v287_v30 = vmul.f32 0.031622775, %v286_v28 }
  0xb6   : > { %v288_v31 = vmax.f32 %v287_v30, 0.0  ;;  %v301_v62 = vand.u32 2147483648, %v287_v30  ;;  %vm295_vm7 = vweird.f32 %v287_v30  ;;  %v299_v63 = vand.u32 2147483647, %v287_v30 }
  0xb8   : > { %v289_v32 = vmin.f32 %v288_v31, 0.9999999  ;;  %v302_v4 = vor.u32 1.1754944e-38, %v301_v62  ;;  %vm300_vm9 = vcmp.eq.f32.partialorder %v299_v63, 8.507059e+37 }
  0xba   : > { %v306_v33 = vsub.f32 1.0, %v289_v32  ;;  %v305_v53 = vadd.f32 1.0, %v289_v32 }
  0xbc   : > { %646 = vrcp.f32 %v306_v33  ;;  %v318_v44 = vand.u32 2147483648, %v306_v33  ;;  %v316_v47 = vand.u32 2147483647, %v306_v33  ;;  %vm312_vm3 = vweird.f32 %v306_v33 }
  0xbd   : > { %648 = vrcp.f32 %v287_v30 }
  0xbe   : > { %v319_v51 = vor.u32 1.1754944e-38, %v318_v44  ;;  %vm317_vm5 = vcmp.eq.f32.partialorder %v316_v47, 8.507059e+37 }
  0xc2   : > { %v647_v37 = vpop.eup %646 }
  0xc3   : > { %v649_v39 = vpop.eup %648  ;;  %v308_v40 = vmul.f32 %v647_v37, %v306_v33  ;;  %vm313_vm2 = vweird.f32 %v647_v37 }
  0xc4   : > { %v291_v43 = vmul.f32 %v649_v39, %v287_v30  ;;  %vm314_vm4 = vmor %vm312_vm3, %vm313_vm2  ;;  %vm296_vm6 = vweird.f32 %v649_v39 }
  0xc5   : > { %v309_v42 = vsub.f32 1.0, %v308_v40  ;;  %vm297_vm8 = vmor %vm295_vm7, %vm296_vm6 }
  0xc6   : > { %v292_v50 = vsub.f32 1.0, %v291_v43  ;;  %v441_v43 = vstv %s566_s14 }
  0xc7   : > { %v310_v46 = vmul.f32 %v647_v37, %v309_v42  ;;  %v442_v47 = vmul.f32 %v441_v43, %v941_v0 }
  0xc8   : > { %v293_v58 = vmul.f32 %v649_v39, %v292_v50 }
  0xc9   : > { %v311_v49 = vadd.f32 %v647_v37, %v310_v46  ;;  %v439_v46 = vstv %s269_s15 }
  0xca   : > { %v294_v61 = vadd.f32 %v649_v39, %v293_v58 }
  0xcb   : > { %v315_v54 = vsel %vm314_vm4, %v647_v37, %v311_v49 }
  0xcc   : > { %v320_v55 = vsel %vm317_vm5, %v319_v51, %v315_v54  ;;  %v298_v2 = vsel %vm297_vm8, %v649_v39, %v294_v61 }
  0xcd   : > { %v321_v57 = vmul.f32 %v320_v55, %v305_v53  ;;  %v303_v6 = vsel %vm300_vm9, %v302_v4, %v298_v2 }
  0xcf   : > { %650 = vlog2.f32 %v321_v57 }
  0xd5   : > { %v651_v1 = vpop.eup %650 }
  0xd6   : > { %v323_v3 = vmul.f32 0.6931472, %v651_v1 }
  0xd8   : > { %v324_v5 = vmul.f32 0.5, %v323_v3 }
  0xda   : > { %v325_v7 = vmul.f32 %v324_v5, %v303_v6 }
  0xdc   : > { %v326_v8 = vmul.f32 %v325_v7, %v941_v0 }
  0xde   : > { %363 = vmatmul.f32.vlgmr.msra.gmra.mxu0 %v326_v8 }
 0x15b   : > { %v364_v15 = vpop.f32.mrf.mxu0 }
 0x15c   : > { %v365_v16 = vadd.f32 %v643_v14, %v364_v15 }
 0x15e   : > { %652 = vtanh.f32 %v365_v16 }
 0x164   : > { %v653_v17 = vpop.eup %652 }
 0x165   : > { %400 = vmatmul.f32.vlgmr.msra.gmra.mxu1 %v653_v17 }
 0x1e2   : > { %v401_v18 = vpop.f32.mrf.mxu1 }
 0x1e3   : > { %v404_v19 = vmul.f32 %v401_v18, %v401_v18 }
 0x1e5   : > { %405 = vadd.xlane.f32.xlu0 %v404_v19 }
 0x258   : > { %v406_v20 = vpop.xlane.xlu0 %405 }
 0x259   : > { %654 = vrsqrt.f32 %v406_v20  ;;  %vm414_vm10 = vcmp.eq.f32.partialorder %v406_v20, inf  ;;  %v417_v28 = vand.u32 2147483648, %v406_v20  ;;  %vm416_vm11 = vcmp.eq.f32.partialorder %v406_v20, 0.0 }
 0x25f   : > { %v655_v21 = vpop.eup %654 }
 0x260   : > { %v408_v22 = vmul.f32 %v655_v21, %v406_v20 }
 0x262   : > { %v409_v23 = vmul.f32 %v655_v21, %v408_v22 }
 0x264   : > { %v410_v24 = vmul.f32 0.5, %v409_v23 }
 0x266   : > { %v411_v25 = vsub.f32 1.5, %v410_v24 }
 0x268   : > { %v412_v26 = vmul.f32 %v655_v21, %v411_v25 }
 0x26a   : > { %v413_v27 = vmul.f32 %v412_v26, %v406_v20 }
 0x26c   : > { %v415_v29 = vsel %vm414_vm10, %v406_v20, %v413_v27 }
 0x26d   : > { %v418_v30 = vsel %vm416_vm11, %v417_v28, %v415_v29 }
 0x26e   : > { %v419_v31 = vmax.f32 %v418_v30, 1e-07 }
 0x270   : > { %v420_v32 = vmul.f32 0.031622775, %v419_v31 }
 0x272   : > { %656 = vrcp.f32 %v420_v32  ;;  %v432_v36 = vand.u32 2147483648, %v420_v32  ;;  %v430_v38 = vand.u32 2147483647, %v420_v32  ;;  %vm426_vm13 = vweird.f32 %v420_v32 }
 0x273   : > { %658 = vtanh.f32 %v420_v32 }
 0x274   : > { %v433_v40 = vor.u32 1.1754944e-38, %v432_v36  ;;  %vm431_vm15 = vcmp.eq.f32.partialorder %v430_v38, 8.507059e+37 }
 0x278   : > { %v657_v33 = vpop.eup %656 }
 0x279   : > { %v422_v34 = vmul.f32 %v657_v33, %v420_v32  ;;  %vm427_vm12 = vweird.f32 %v657_v33  ;;  %v659_v42 = vpop.eup %658 }
 0x27a   : > { %vm428_vm14 = vmor %vm426_vm13, %vm427_vm12 }
 0x27b   : > { %v423_v35 = vsub.f32 1.0, %v422_v34 }
 0x27d   : > { %v424_v37 = vmul.f32 %v657_v33, %v423_v35 }
 0x27f   : > { %v425_v39 = vadd.f32 %v657_v33, %v424_v37 }
 0x281   : > { %v429_v41 = vsel %vm428_vm14, %v657_v33, %v425_v39 }
 0x282   : > { %v434_v44 = vsel %vm431_vm15, %v433_v40, %v429_v41 }
 0x283   : > { %v437_v45 = vmul.f32 %v659_v42, %v434_v44 }
 0x285   : > { %v438_v48 = vmul.f32 %v437_v45, %v401_v18 }
 0x287   : > { %v440_v49 = vmul.f32 %v439_v46, %v438_v48 }
 0x289   : > { %v443_v50 = vadd.f32 %v442_v47, %v440_v49 }
 0x28b   : > { %444 = vst [vmem:[%s263_s7] sm:$0xff] %v443_v50 }
 0x28c   : > { %762 = shalt.err (!%p759_p8)
}
 0x28d   : > { %583 = dma.vmem_to_hbm [thread:$0]  (%p884_p5), %s459_s30, 128, %s461_s8, %s446_s22  }
 0x28e PF: > { %p605_p9 = scmp.ge.s32.totalorder %s809_s21, 2  ;;  %s472_s16 = sand.u32 1, %s797_s18  }
 0x28f   : > { %s473_s17 = scalar_lea.sflag [#allocation4], %s472_s16 }
 0x290   : > { %p596_p10 = pnand %p605_p9, %p888_p6 }
 0x292   : > { %p597_p11 = pneg %p596_p10 }
 0x294   : > { %792 = dma.done.wait (%p597_p11), %s473_s17, 128  }
 0x295   : > { %794 = vsyncadd (%p597_p11), %s473_s17, 4294967168  ;;  %p18_p12 = scmp.ge.s32.totalorder %s871_s24, 4   ;;  %s992_s18 = smov %s801_s19 }
 0x296   : > { %s993_s19 = smov %s805_s20  ;;  %s994_s20 = smov %s882_s27 }
 0x297   : > { %s995_s21 = smov %s871_s24  ;;  %20 = sbr.rel (!%p18_p12) target bundleno = 6 (0x6), region = 89 }
 0x29c   :  { %479 = vsyncpa [#allocation3], 1 }
 0x29d   :  { %481 = vsyncpa [#allocation3 + $0x1], 1 }
 0x29e   :  { %482 = vsyncpa [#allocation8], 1 }
 0x29f   :  { %483 = vsyncpa [#allocation4], 1 }
 0x2a0   :  { %485 = vsyncpa [#allocation4 + $0x1], 1 }
 0x2a1   :  { %486 = vsyncpa [#allocation5], 1 }
 0x2a2   :  { %488 = vsyncpa [#allocation5 + $0x1], 1 }

</bundles_post_ra>
